<compile_context>
chip_gen: v7x
topology: tpu7x:2x2x1
jax: 0.10.0
libtpu: 0.0.40
codegen_flags: <defaults>
</compile_context>

<pallas_src>
import functools

import jax
import jax.numpy as jnp
from jax import lax
from jax.experimental import pallas as pl
from jax.experimental.pallas import tpu as pltpu

RANDN_CLIP_VALUE = 10.0
LOGSTD_MIN = -5.0
LOGSTD_MAX = 2.0
_HALF_LOG_2PI = 0.9189385332046727  # 0.5 * log(2*pi)


def _round_up(x, m):
    return (x + m - 1) // m * m


def _device_supports_bf16_eup():
    """bf16 VPU/EUP exists on v6e/v7x; v5e (and older) should stay f32."""
    try:
        kind = jax.devices()[0].device_kind.lower()
    except Exception:  # pragma: no cover - defensive
        return False
    return any(tag in kind for tag in ("v6", "v7", "7x"))


def _gaussian_kernel(x_ref, eps_ref, w1_ref, b1_ref, w2_ref, b2_ref,
                     wh_ref, bh_ref, out_ref, eps_scr, *,
                     act_dim_total, tanh_dtype):
    """Fused forward for one batch tile.

    x_ref   : (bb, obs)       f32 flattened cond['state']
    eps_ref : (bb, out_dim)   f32 N(0,1) noise (real width, not padded)
    w1/w2   : bf16 hidden-layer weights, b1/b2 f32 biases
    wh/bh   : fused (mean | log_std) head, zero-padded to 2*out_pad columns
              (zero pad => log_std=0, scale=1 on pad cols; masked out below —
              keep padding value and mask coupled).
    out_ref : (bb, out_pad)   bf16 packed: cols [0, out_dim) = action,
                              col out_dim = summed log-prob, rest don't-care.
    eps_scr : (bb, out_pad)   f32 VMEM scratch used to widen eps lane-densely.
    """
    mm_dtype = w1_ref.dtype
    bb, out_pad = out_ref.shape

    # --- policy network: 2-layer tanh MLP, fused mean/log-std head ---
    h1 = jnp.tanh((jnp.dot(x_ref[...].astype(mm_dtype), w1_ref[...],
                           preferred_element_type=jnp.float32)
                   + b1_ref[...]).astype(tanh_dtype))
    h2 = jnp.tanh((jnp.dot(h1.astype(mm_dtype), w2_ref[...],
                           preferred_element_type=jnp.float32)
                   + b2_ref[...]).astype(tanh_dtype))
    y = jnp.dot(h2.astype(mm_dtype), wh_ref[...],
                preferred_element_type=jnp.float32) + bh_ref[...]

    mean = y[:, :out_pad]                        # lane-aligned split (offset 0)
    log_std = jnp.clip(y[:, out_pad:], LOGSTD_MIN, LOGSTD_MAX)
    scale = jnp.exp(log_std)

    # Widen eps (bb, out_dim) -> (bb, out_pad) with zero pad via VMEM scratch
    # (static-slice ref stores only; keeps the final output store lane-dense
    # without materializing a padded eps in HBM).
    eps_scr[...] = jnp.zeros_like(eps_scr)
    eps_scr[:, :act_dim_total] = jnp.clip(
        eps_ref[...], -RANDN_CLIP_VALUE, RANDN_CLIP_VALUE)
    eps_c = eps_scr[...]

    # --- dist.sample() then clamp_(mean ± c*scale) ---
    # scale > 0, so clamp(mean + scale*eps) == mean + scale*clip(eps, ±c) and
    # the normalized residual of the clamped sample is clip(eps, ±c) itself
    # -> log-prob needs no divide.  (Exact vs. PyTorch up to FP rounding.)
    sample = mean + scale * eps_c

    # --- dist.log_prob(sample).sum(1) over the real (unpadded) action dims ---
    col = lax.broadcasted_iota(jnp.int32, (bb, out_pad), 1)
    valid = col < act_dim_total
    logp = -0.5 * eps_c * eps_c - log_std - _HALF_LOG_2PI
    logp_sum = jnp.sum(jnp.where(valid, logp, 0.0), axis=1, keepdims=True)

    # TODO(synk): tanh_output squashing branch not implemented (default False).
    # Single lane-dense bf16 store: [action | log-prob | don't-care pad].
    packed = jnp.where(col == act_dim_total, logp_sum,
                       jnp.where(valid, sample, 0.0))
    out_ref[...] = packed.astype(out_ref.dtype)


def prepare_params(params, *, matmul_dtype=jnp.bfloat16):
    """One-time weight prep (hoisted out of the per-call forward).

    Fuses the mean / log-std heads into one (hidden, 2*out_pad) matrix, zero
    pads the head to a multiple of 128 lanes (+1 log-prob column) and casts
    matmul operands to bf16.  Runs eagerly, so the returned arrays are ready
    device buffers reused by every forward call.
    """
    w1, b1, w2, b2, wm, bm, ws, bs = params
    out_dim = wm.shape[1]
    out_pad = _round_up(out_dim + 1, 128)
    pad_n = out_pad - out_dim

    def pad_head(w, b):
        # Zero pad => padded log_std = 0 / scale = 1; the kernel masks those
        # columns with `col < out_dim` — keep these two coupled.
        return (jnp.pad(w, ((0, 0), (0, pad_n))),
                jnp.pad(b, ((0, 0), (0, pad_n))))

    wm_p, bm_p = pad_head(wm, bm)
    ws_p, bs_p = pad_head(ws, bs)
    return {
        "w1": jnp.asarray(w1, matmul_dtype),
        "b1": jnp.asarray(b1, jnp.float32),
        "w2": jnp.asarray(w2, matmul_dtype),
        "b2": jnp.asarray(b2, jnp.float32),
        "wh": jnp.concatenate([wm_p, ws_p], axis=1).astype(matmul_dtype),
        "bh": jnp.concatenate([bm_p, bs_p], axis=1).astype(jnp.float32),
        "out_dim": out_dim,
    }


def gaussian_model_forward(state, eps, prepared, horizon_steps, *,
                           block_b=1024, tanh_in_bf16=None):
    """GaussianModel.forward(cond, get_logprob=True, tanh_output=False).

    state: (B, obs_flat) f32; eps: (B, T*A) standard-normal noise (sampling
    randomness supplied from outside the kernel).  `prepared` comes from
    prepare_params().  Returns (sampled_action (B, T, A), log_prob (B,)).
    """
    w1, b1, w2, b2, wh, bh = (prepared[k] for k in
                              ("w1", "b1", "w2", "b2", "wh", "bh"))
    out_dim = prepared["out_dim"]
    out_pad = wh.shape[1] // 2
    B = state.shape[0]
    act_dim = out_dim // horizon_steps

    if tanh_in_bf16 is None:
        tanh_in_bf16 = _device_supports_bf16_eup()
    tanh_dtype = jnp.bfloat16 if tanh_in_bf16 else jnp.float32

    state = state.reshape(B, -1).astype(jnp.float32)
    eps = eps.reshape(B, out_dim).astype(jnp.float32)
    weights = (w1, b1, w2, b2, wh, bh)

    kernel = functools.partial(_gaussian_kernel, act_dim_total=out_dim,
                               tanh_dtype=tanh_dtype)

    hidden = w1.shape[1]
    obs = state.shape[1]
    cost = pl.CostEstimate(
        flops=int(2 * B * (obs * hidden + hidden * hidden
                           + hidden * 2 * out_pad)),
        transcendentals=int(B * (2 * hidden + out_pad)),
        bytes_accessed=int(state.size * 4 + eps.size * 4
                           + sum(int(a.size) * a.dtype.itemsize
                                 for a in weights)
                           + B * out_pad * 2),
    )
    vmem_limit = 32 * 1024 * 1024  # safe on v5e/v6e/v7x, headroom for 1024-row tiles

    if B > block_b:
        # Rollout-sized batch: large (8,128)-aligned batch tiles, weights
        # VMEM-resident (constant index_map).  Keep >= 2 grid steps so the
        # "parallel" batch axis can be sharded across both v7x TensorCores;
        # non-divisible batches get a host-padded final tile (no fully
        # VMEM-resident fallback / VMEM cliff).
        block = min(block_b, _round_up(pl.cdiv(B, 2), 8))
        grid_n = pl.cdiv(B, block)
        b_pad = grid_n * block
        if b_pad != B:
            state = jnp.pad(state, ((0, b_pad - B), (0, 0)))
            eps = jnp.pad(eps, ((0, b_pad - B), (0, 0)))
        packed = pl.pallas_call(
            kernel,
            out_shape=jax.ShapeDtypeStruct((b_pad, out_pad), jnp.bfloat16),
            grid=(grid_n,),
            in_specs=[pl.BlockSpec((block, obs), lambda i: (i, 0)),
                      pl.BlockSpec((block, out_dim), lambda i: (i, 0))]
                     + [pl.BlockSpec(a.shape, lambda i: (0, 0))
                        for a in weights],
            out_specs=pl.BlockSpec((block, out_pad), lambda i: (i, 0)),
            scratch_shapes=[pltpu.VMEM((block, out_pad), jnp.float32)],
            compiler_params=pltpu.CompilerParams(
                dimension_semantics=("parallel",),
                vmem_limit_bytes=vmem_limit),
            cost_estimate=cost,
        )(state, eps, *weights)
    else:
        # Small batch: gridless, fully VMEM-resident, no pipeline machinery.
        vmem = pltpu.MemorySpace.VMEM
        packed = pl.pallas_call(
            kernel,
            out_shape=jax.ShapeDtypeStruct((B, out_pad), jnp.bfloat16),
            in_specs=[pl.BlockSpec(memory_space=vmem)
                      for _ in range(2 + len(weights))],
            out_specs=pl.BlockSpec(memory_space=vmem),
            scratch_shapes=[pltpu.VMEM((B, out_pad), jnp.float32)],
            compiler_params=pltpu.CompilerParams(vmem_limit_bytes=vmem_limit),
            cost_estimate=cost,
        )(state, eps, *weights)

    packed = packed[:B]
    action = packed[:, :out_dim].astype(jnp.float32).reshape(
        B, horizon_steps, act_dim)
    log_prob = packed[:, out_dim].astype(jnp.float32)
    return action, log_prob


def init_params(key, obs_dim, hidden_dim, out_dim):
    ks = jax.random.split(key, 4)
    s1 = 1.0 / jnp.sqrt(obs_dim)
    s2 = 1.0 / jnp.sqrt(hidden_dim)
    w1 = jax.random.uniform(ks[0], (obs_dim, hidden_dim), jnp.float32, -s1, s1)
    b1 = jnp.zeros((1, hidden_dim), jnp.float32)
    w2 = jax.random.uniform(ks[1], (hidden_dim, hidden_dim), jnp.float32, -s2, s2)
    b2 = jnp.zeros((1, hidden_dim), jnp.float32)
    wm = jax.random.uniform(ks[2], (hidden_dim, out_dim), jnp.float32, -s2, s2)
    bm = jnp.zeros((1, out_dim), jnp.float32)
    ws = jax.random.uniform(ks[3], (hidden_dim, out_dim), jnp.float32, -s2, s2)
    bs = jnp.full((1, out_dim), -1.0, jnp.float32)   # smallish initial std
    return (w1, b1, w2, b2, wm, bm, ws, bs)


def _reference_forward(state, eps, params, horizon_steps, *,
                       matmul_dtype=jnp.bfloat16, tanh_dtype=jnp.float32):
    """Pure-JAX reference matching the PyTorch module (same matmul/act dtypes)."""
    w1, b1, w2, b2, wm, bm, ws, bs = params
    B = state.shape[0]
    c = lambda a: a.astype(matmul_dtype)
    h1 = jnp.tanh((jnp.dot(c(state), c(w1), preferred_element_type=jnp.float32)
                   + b1).astype(tanh_dtype)).astype(jnp.float32)
    h2 = jnp.tanh((jnp.dot(c(h1), c(w2), preferred_element_type=jnp.float32)
                   + b2).astype(tanh_dtype)).astype(jnp.float32)
    mean = jnp.dot(c(h2), c(wm), preferred_element_type=jnp.float32) + bm
    log_std = jnp.clip(
        jnp.dot(c(h2), c(ws), preferred_element_type=jnp.float32) + bs,
        LOGSTD_MIN, LOGSTD_MAX)
    scale = jnp.exp(log_std)
    sample = mean + scale * eps
    sample = jnp.clip(sample, mean - RANDN_CLIP_VALUE * scale,
                      mean + RANDN_CLIP_VALUE * scale)
    z = (sample - mean) / scale
    logp = (-0.5 * z * z - log_std - _HALF_LOG_2PI).sum(axis=1)
    return sample.reshape(B, horizon_steps, -1), logp


if __name__ == "__main__":
    # Shapes consistent with the module: cond['state'] (B, To, obs) flattened;
    # horizon T, per-step action dim A -> network output T*A.
    B, To, OBS = 8, 1, 16
    HIDDEN = 128
    T, A = 4, 8
    OUT = T * A

    key = jax.random.PRNGKey(0)
    k_s, k_e, k_p, k_s2, k_e2, k_s3, k_e3 = jax.random.split(key, 7)

    raw_params = init_params(k_p, To * OBS, HIDDEN, OUT)
    prepared = prepare_params(raw_params)       # one-time prep, reused below

    tanh_bf16 = _device_supports_bf16_eup()
    tanh_dtype = jnp.bfloat16 if tanh_bf16 else jnp.float32
    TOL = dict(atol=2e-2, rtol=2e-2)            # output slab is bf16

    # 1) Small batch -> gridless, fully VMEM-resident path.
    cond_state = jax.random.normal(k_s, (B, To, OBS), jnp.float32)
    state_flat = cond_state.reshape(B, To * OBS)
    eps = jax.random.normal(k_e, (B, OUT), jnp.float32)
    action, log_prob = gaussian_model_forward(state_flat, eps, prepared, T,
                                              tanh_in_bf16=tanh_bf16)
    action = jax.block_until_ready(action)
    log_prob = jax.block_until_ready(log_prob)
    assert action.shape == (B, T, A) and log_prob.shape == (B,)
    assert bool(jnp.all(jnp.isfinite(action))) and bool(jnp.all(jnp.isfinite(log_prob)))
    a_ref, lp_ref = _reference_forward(state_flat, eps, raw_params, T,
                                       tanh_dtype=tanh_dtype)
    assert bool(jnp.allclose(action, a_ref, **TOL))
    assert bool(jnp.allclose(log_prob, lp_ref, **TOL))

    # 2) Rollout-sized batch -> batch-tiled path with >= 2 parallel grid steps.
    B2 = 256
    state2 = jax.random.normal(k_s2, (B2, To * OBS), jnp.float32)
    eps2 = jax.random.normal(k_e2, (B2, OUT), jnp.float32)
    action2, log_prob2 = gaussian_model_forward(state2, eps2, prepared, T,
                                                block_b=128,
                                                tanh_in_bf16=tanh_bf16)
    action2 = jax.block_until_ready(action2)
    log_prob2 = jax.block_until_ready(log_prob2)
    assert action2.shape == (B2, T, A) and log_prob2.shape == (B2,)
    assert bool(jnp.all(jnp.isfinite(action2))) and bool(jnp.all(jnp.isfinite(log_prob2)))
    a_ref2, lp_ref2 = _reference_forward(state2, eps2, raw_params, T,
                                         tanh_dtype=tanh_dtype)
    assert bool(jnp.allclose(action2, a_ref2, **TOL))
    assert bool(jnp.allclose(log_prob2, lp_ref2, **TOL))

    # 3) Non-divisible batch -> tiled path with a host-padded final tile
    #    (previously fell back to the fully-resident path).
    B3 = 200
    state3 = jax.random.normal(k_s3, (B3, To * OBS), jnp.float32)
    eps3 = jax.random.normal(k_e3, (B3, OUT), jnp.float32)
    action3, log_prob3 = gaussian_model_forward(state3, eps3, prepared, T,
                                                block_b=128,
                                                tanh_in_bf16=tanh_bf16)
    action3 = jax.block_until_ready(action3)
    log_prob3 = jax.block_until_ready(log_prob3)
    assert action3.shape == (B3, T, A) and log_prob3.shape == (B3,)
    assert bool(jnp.all(jnp.isfinite(action3))) and bool(jnp.all(jnp.isfinite(log_prob3)))
    a_ref3, lp_ref3 = _reference_forward(state3, eps3, raw_params, T,
                                         tanh_dtype=tanh_dtype)
    assert bool(jnp.allclose(action3, a_ref3, **TOL))
    assert bool(jnp.allclose(log_prob3, lp_ref3, **TOL))

    print("KERNEL_OK")
</pallas_src>

<mosaic_0001>
module attributes {stable_mosaic.version = 11 : i64} {
  func.func @_gaussian_kernel(%arg0: memref<8x16xf32, #tpu.memory_space<vmem>>, %arg1: memref<8x32xf32, #tpu.memory_space<vmem>>, %arg2: memref<16x128xbf16, #tpu.memory_space<vmem>>, %arg3: memref<1x128xf32, #tpu.memory_space<vmem>>, %arg4: memref<128x128xbf16, #tpu.memory_space<vmem>>, %arg5: memref<1x128xf32, #tpu.memory_space<vmem>>, %arg6: memref<128x256xbf16, #tpu.memory_space<vmem>>, %arg7: memref<1x256xf32, #tpu.memory_space<vmem>>, %arg8: memref<8x128xbf16, #tpu.memory_space<vmem>>, %arg9: memref<8x128xf32, #tpu.memory_space<vmem>>) attributes {dimension_semantics = [], scalar_prefetch = 0 : i64, scratch_operands = 1 : i64, tpu.core_type = #tpu.core_type<tc>} {
    %c0 = arith.constant 0 : index
    %c0_0 = arith.constant 0 : index
    %0 = vector.load %arg0[%c0, %c0_0] : memref<8x16xf32, #tpu.memory_space<vmem>>, vector<8x16xf32>
    %1 = arith.truncf %0 : vector<8x16xf32> to vector<8x16xbf16>
    %c0_1 = arith.constant 0 : index
    %c0_2 = arith.constant 0 : index
    %2 = vector.load %arg2[%c0_1, %c0_2] : memref<16x128xbf16, #tpu.memory_space<vmem>>, vector<16x128xbf16>
    %cst = arith.constant dense<0.000000e+00> : vector<8x128xf32>
    %3 = tpu.matmul %1, %2, %cst {dimension_numbers = #tpu.dot_dimension_numbers<[1], [0], [0], [1], [0, 0, 1, 1], [], []>} : vector<8x16xbf16>, vector<16x128xbf16>, vector<8x128xf32> -> vector<8x128xf32>
    %c0_3 = arith.constant 0 : index
    %c0_4 = arith.constant 0 : index
    %4 = vector.load %arg3[%c0_3, %c0_4] : memref<1x128xf32, #tpu.memory_space<vmem>>, vector<1x128xf32>
    %5 = vector.broadcast %4 : vector<1x128xf32> to vector<8x128xf32>
    %6 = arith.addf %3, %5 : vector<8x128xf32>
    %7 = math.tanh %6 : vector<8x128xf32>
    %8 = arith.truncf %7 : vector<8x128xf32> to vector<8x128xbf16>
    %c0_5 = arith.constant 0 : index
    %c0_6 = arith.constant 0 : index
    %9 = vector.load %arg4[%c0_5, %c0_6] : memref<128x128xbf16, #tpu.memory_space<vmem>>, vector<128x128xbf16>
    %cst_7 = arith.constant dense<0.000000e+00> : vector<8x128xf32>
    %10 = tpu.matmul %8, %9, %cst_7 {dimension_numbers = #tpu.dot_dimension_numbers<[1], [0], [0], [1], [0, 0, 1, 1], [], []>} : vector<8x128xbf16>, vector<128x128xbf16>, vector<8x128xf32> -> vector<8x128xf32>
    %c0_8 = arith.constant 0 : index
    %c0_9 = arith.constant 0 : index
    %11 = vector.load %arg5[%c0_8, %c0_9] : memref<1x128xf32, #tpu.memory_space<vmem>>, vector<1x128xf32>
    %12 = vector.broadcast %11 : vector<1x128xf32> to vector<8x128xf32>
    %13 = arith.addf %10, %12 : vector<8x128xf32>
    %14 = math.tanh %13 : vector<8x128xf32>
    %15 = arith.truncf %14 : vector<8x128xf32> to vector<8x128xbf16>
    %c0_10 = arith.constant 0 : index
    %c0_11 = arith.constant 0 : index
    %16 = vector.load %arg6[%c0_10, %c0_11] : memref<128x256xbf16, #tpu.memory_space<vmem>>, vector<128x256xbf16>
    %cst_12 = arith.constant dense<0.000000e+00> : vector<8x256xf32>
    %17 = tpu.matmul %15, %16, %cst_12 {dimension_numbers = #tpu.dot_dimension_numbers<[1], [0], [0], [1], [0, 0, 1, 1], [], []>} : vector<8x128xbf16>, vector<128x256xbf16>, vector<8x256xf32> -> vector<8x256xf32>
    %c0_13 = arith.constant 0 : index
    %c0_14 = arith.constant 0 : index
    %18 = vector.load %arg7[%c0_13, %c0_14] : memref<1x256xf32, #tpu.memory_space<vmem>>, vector<1x256xf32>
    %19 = vector.broadcast %18 : vector<1x256xf32> to vector<8x256xf32>
    %20 = arith.addf %17, %19 : vector<8x256xf32>
    %21 = vector.extract_strided_slice %20 {offsets = [0, 0], sizes = [8, 128], strides = [1, 1]} : vector<8x256xf32> to vector<8x128xf32>
    %22 = vector.extract_strided_slice %20 {offsets = [0, 128], sizes = [8, 128], strides = [1, 1]} : vector<8x256xf32> to vector<8x128xf32>
    %cst_15 = arith.constant -5.000000e+00 : f32
    %cst_16 = arith.constant 2.000000e+00 : f32
    %23 = vector.broadcast %cst_15 : f32 to vector<8x128xf32>
    %24 = arith.maximumf %23, %22 : vector<8x128xf32>
    %25 = vector.broadcast %cst_16 : f32 to vector<8x128xf32>
    %26 = arith.minimumf %25, %24 : vector<8x128xf32>
    %27 = math.exp %26 : vector<8x128xf32>
    %cst_17 = arith.constant 0.000000e+00 : f32
    %28 = vector.broadcast %cst_17 : f32 to vector<8x128xf32>
    %c0_18 = arith.constant 0 : index
    %c0_19 = arith.constant 0 : index
    %29 = vector.load %arg9[%c0_18, %c0_19] : memref<8x128xf32, #tpu.memory_space<vmem>>, vector<8x128xf32>
    tpu.vector_store %arg9[%c0_18, %c0_19], %28 {strides = array<i32>} : memref<8x128xf32, #tpu.memory_space<vmem>>, vector<8x128xf32>,
    %c0_20 = arith.constant 0 : index
    %c0_21 = arith.constant 0 : index
    %30 = vector.load %arg1[%c0_20, %c0_21] : memref<8x32xf32, #tpu.memory_space<vmem>>, vector<8x32xf32>
    %cst_22 = arith.constant -1.000000e+01 : f32
    %cst_23 = arith.constant 1.000000e+01 : f32
    %31 = vector.broadcast %cst_22 : f32 to vector<8x32xf32>
    %32 = arith.maximumf %31, %30 : vector<8x32xf32>
    %33 = vector.broadcast %cst_23 : f32 to vector<8x32xf32>
    %34 = arith.minimumf %33, %32 : vector<8x32xf32>
    %c0_24 = arith.constant 0 : index
    %c0_25 = arith.constant 0 : index
    %35 = vector.load %arg9[%c0_24, %c0_25] : memref<8x128xf32, #tpu.memory_space<vmem>>, vector<8x32xf32>
    tpu.vector_store %arg9[%c0_24, %c0_25], %34 {strides = array<i32>} : memref<8x128xf32, #tpu.memory_space<vmem>>, vector<8x32xf32>,
    %c0_26 = arith.constant 0 : index
    %c0_27 = arith.constant 0 : index
    %36 = vector.load %arg9[%c0_26, %c0_27] : memref<8x128xf32, #tpu.memory_space<vmem>>, vector<8x128xf32>
    %37 = arith.mulf %27, %36 : vector<8x128xf32>
    %38 = arith.addf %21, %37 : vector<8x128xf32>
    %39 = tpu.iota {dimensions = array<i32: 1>} : vector<8x128xi32>
    %c32_i32 = arith.constant 32 : i32
    %40 = vector.broadcast %c32_i32 : i32 to vector<8x128xi32>
    %41 = arith.cmpi slt, %39, %40 : vector<8x128xi32>
    %cst_28 = arith.constant -5.000000e-01 : f32
    %42 = vector.broadcast %cst_28 : f32 to vector<8x128xf32>
    %43 = arith.mulf %42, %36 : vector<8x128xf32>
    %44 = arith.mulf %43, %36 : vector<8x128xf32>
    %45 = arith.subf %44, %26 : vector<8x128xf32>
    %cst_29 = arith.constant 0.918938517 : f32
    %46 = vector.broadcast %cst_29 : f32 to vector<8x128xf32>
    %47 = arith.subf %45, %46 : vector<8x128xf32>
    %cst_30 = arith.constant 0.000000e+00 : f32
    %48 = vector.broadcast %cst_30 : f32 to vector<8x128xf32>
    %49 = arith.select %41, %47, %48 : vector<8x128xi1>, vector<8x128xf32>
    %cst_31 = arith.constant dense<0.000000e+00> : vector<8xf32>
    %50 = vector.multi_reduction <add>, %49, %cst_31 [1] : vector<8x128xf32> to vector<8xf32>
    %51 = vector.shape_cast %50 : vector<8xf32> to vector<8x1xf32>
    %c32_i32_32 = arith.constant 32 : i32
    %52 = vector.broadcast %c32_i32_32 : i32 to vector<8x128xi32>
    %53 = arith.cmpi eq, %39, %52 : vector<8x128xi32>
    %cst_33 = arith.constant 0.000000e+00 : f32
    %54 = vector.broadcast %cst_33 : f32 to vector<8x128xf32>
    %55 = arith.select %41, %38, %54 : vector<8x128xi1>, vector<8x128xf32>
    %56 = vector.shape_cast %51 : vector<8x1xf32> to vector<8x1xf32>
    %57 = vector.broadcast %56 : vector<8x1xf32> to vector<8x128xf32>
    %58 = arith.select %53, %57, %55 : vector<8x128xi1>, vector<8x128xf32>
    %59 = arith.truncf %58 : vector<8x128xf32> to vector<8x128xbf16>
    %c0_34 = arith.constant 0 : index
    %c0_35 = arith.constant 0 : index
    %60 = vector.load %arg8[%c0_34, %c0_35] : memref<8x128xbf16, #tpu.memory_space<vmem>>, vector<8x128xbf16>
    tpu.vector_store %arg8[%c0_34, %c0_35], %59 {strides = array<i32>} : memref<8x128xbf16, #tpu.memory_space<vmem>>, vector<8x128xbf16>,
    return
  }
}

</mosaic_0001>

<bundles_post_ra>
// kernel: tpu_custom_call.1
= control target key start
LH: loop header
LB: loop body
LE: loop exit
PB: predicated region body
PF: predicated region fallthrough
CT: control target
= control target key end

     0   :  { %13 = vsyncpa [#allocation4], 0  ;;  %s869_s0 = inlined_call_operand.hbm [shape: f32[8,16], index: 0, kind: input, shape index: {}]   ;;  %s870_s1 = inlined_call_operand.hbm [shape: f32[8,32], index: 1, kind: input, shape index: {}]   ;;  %s871_s2 = inlined_call_operand.hbm [shape: bf16[16,128], index: 2, kind: input, shape index: {}]   ;;  %s872_s3 = inlined_call_operand.vmem [shape: f32[1,128], index: 3, kind: input, shape index: {}]   ;;  %s873_s4 = inlined_call_operand.hbm [shape: bf16[128,128], index: 4, kind: input, shape index: {}]   ;;  %s874_s5 = inlined_call_operand.vmem [shape: f32[1,128], index: 5, kind: input, shape index: {}]   ;;  %s875_s6 = inlined_call_operand.hbm [shape: bf16[128,256], index: 6, kind: input, shape index: {}]   ;;  %s876_s7 = inlined_call_operand.vmem [shape: f32[1,256], index: 7, kind: input, shape index: {}]   ;;  %s877_s8 = inlined_call_operand.hbm [shape: bf16[8,128], index: 8, kind: output, shape index: {}]  }
   0x1   :  { %14 = vsyncpa [#allocation7], 0 }
   0x2   :  { %15 = vsyncpa [#allocation10], 0 }
   0x3   :  { %16 = vsyncpa [#allocation5], 0  ;;  %s724_s27 = smov [#allocation6]   ;;  %s584_s9 = scalar_lea.hbm %s870_s1, 128 }
   0x4   :  { %s33_s28 = sshll.u32 %s724_s27, 4  ;;  %p585_p0 = scmp.ne.s32.totalorder %s870_s1, %s584_s9  ;;  %s34_s28 = int_to_ptr.vmem [resolvable:$true] %s33_s28 }
   0x5   :  { %p588_p1 = scmp.lt.u32.totalorder %s584_s9, %s870_s1 }
   0x7   :  { %p590_p2 = pnand %p588_p1, %p585_p0 }
   0x9   :  { %593 = shalt.err (!%p590_p2)
}
   0xa   :  { %s594_s14 = scalar_lea.vmem %s34_s28, 128  ;;  %p599_p4 = scmp.lt.s32.totalorder %s34_s28, %s34_s28 }
   0xb   :  { %p595_p3 = scmp.ne.s32.totalorder %s34_s28, %s594_s14  ;;  %p600_p5 = scmp.lt.s32.totalorder %s594_s14, %s594_s14 }
   0xd   :  { %p601_p6 = por %p600_p5, %p599_p4 }
   0xf   :  { %p602_p7 = pnand %p601_p6, %p595_p3 }
  0x11   :  { %605 = shalt.err (!%p602_p7)
}
  0x12   :  { %36 = dma.hbm_to_vmem [thread:$0]  %s870_s1, 128, %s34_s28, [#allocation7]  }
  0x13   :  { %s725_s17 = smov [#allocation9]   ;;  %s726_s19 = smov [#allocation3]  }
  0x14   :  { %s56_s18 = sshll.u32 %s725_s17, 4  ;;  %s23_s20 = sshll.u32 %s726_s19, 4  ;;  %s57_s18 = int_to_ptr.vmem [resolvable:$true] %s56_s18  ;;  %s24_s20 = int_to_ptr.vmem [resolvable:$true] %s23_s20 }
  0x15   :  { %s606_s23 = scalar_lea.hbm %s873_s4, 1024 }
  0x16   :  { %p607_p8 = scmp.ne.s32.totalorder %s873_s4, %s606_s23  ;;  %p610_p9 = scmp.lt.u32.totalorder %s606_s23, %s873_s4 }
  0x18   :  { %p612_p10 = pnand %p610_p9, %p607_p8 }
  0x1a   :  { %615 = shalt.err (!%p612_p10)
}
  0x1b   :  { %s616_s1 = scalar_lea.vmem %s57_s18, 1024  ;;  %p621_p12 = scmp.lt.s32.totalorder %s57_s18, %s57_s18 }
  0x1c   :  { %p617_p11 = scmp.ne.s32.totalorder %s57_s18, %s616_s1  ;;  %p622_p13 = scmp.lt.s32.totalorder %s616_s1, %s616_s1 }
  0x1e   :  { %p623_p0 = por %p622_p13, %p621_p12 }
  0x20   :  { %p624_p1 = pnand %p623_p0, %p617_p11 }
  0x22   :  { %627 = shalt.err (!%p624_p1)
}
  0x23   :  { %s727_s28 = smov 64   ;;  %s728_s29 = smov 4  }
  0x24   :  { %62 = dma.hbm_to_vmem [thread:$0]  %s873_s4, 1024, %s57_s18, [#allocation10], %s727_s28, %s727_s28, %s728_s29  }
  0x25   :  { %s628_s12 = scalar_lea.hbm %s869_s0, 128 }
  0x26   :  { %p629_p2 = scmp.ne.s32.totalorder %s869_s0, %s628_s12  ;;  %p632_p3 = scmp.lt.u32.totalorder %s628_s12, %s869_s0 }
  0x28   :  { %p634_p4 = pnand %p632_p3, %p629_p2 }
  0x2a   :  { %637 = shalt.err (!%p634_p4)
}
  0x2b   :  { %s638_s17 = scalar_lea.vmem %s24_s20, 128  ;;  %p643_p6 = scmp.lt.s32.totalorder %s24_s20, %s24_s20 }
  0x2c   :  { %p639_p5 = scmp.ne.s32.totalorder %s24_s20, %s638_s17  ;;  %p644_p7 = scmp.lt.s32.totalorder %s638_s17, %s638_s17 }
  0x2e   :  { %p645_p8 = por %p644_p7, %p643_p6 }
  0x30   :  { %p646_p9 = pnand %p645_p8, %p639_p5 }
  0x32   :  { %649 = shalt.err (!%p646_p9)
}
  0x33   :  { %26 = dma.hbm_to_vmem [thread:$0]  %s869_s0, 128, %s24_s20, [#allocation4]  }
  0x34   :  { %s729_s19 = smov [#allocation8]   ;;  %s730_s22 = smov [#allocation11]  }
  0x35   :  { %s42_s21 = sshll.u32 %s729_s19, 4  ;;  %s70_s23 = sshll.u32 %s730_s22, 4  ;;  %s43_s21 = int_to_ptr.vmem [resolvable:$true] %s42_s21  ;;  %s71_s23 = int_to_ptr.vmem [resolvable:$true] %s70_s23 }
  0x36   :  { %s650_s26 = scalar_lea.hbm %s871_s2, 128 }
  0x37   :  { %p651_p10 = scmp.ne.s32.totalorder %s871_s2, %s650_s26  ;;  %p654_p11 = scmp.lt.u32.totalorder %s650_s26, %s871_s2 }
  0x39   :  { %p656_p12 = pnand %p654_p11, %p651_p10 }
  0x3b   :  { %659 = shalt.err (!%p656_p12)
}
  0x3c   :  { %s660_s0 = scalar_lea.vmem %s43_s21, 128  ;;  %p665_p0 = scmp.lt.s32.totalorder %s43_s21, %s43_s21 }
  0x3d   :  { %p661_p13 = scmp.ne.s32.totalorder %s43_s21, %s660_s0  ;;  %p666_p1 = scmp.lt.s32.totalorder %s660_s0, %s660_s0 }
  0x3f   :  { %p667_p2 = por %p666_p1, %p665_p0 }
  0x41   :  { %p668_p3 = pnand %p667_p2, %p661_p13 }
  0x43   :  { %671 = shalt.err (!%p668_p3)
}
  0x44   :  { %48 = dma.hbm_to_vmem [thread:$0]  %s871_s2, 128, %s43_s21, [#allocation7], %s727_s28, %s727_s28, %s728_s29  }
  0x45   :  { %s672_s13 = scalar_lea.hbm %s875_s6, 2048 }
  0x46   :  { %p673_p4 = scmp.ne.s32.totalorder %s875_s6, %s672_s13  ;;  %p676_p5 = scmp.lt.u32.totalorder %s672_s13, %s875_s6 }
  0x48   :  { %p678_p6 = pnand %p676_p5, %p673_p4 }
  0x4a   :  { %681 = shalt.err (!%p678_p6)
}
  0x4b   :  { %s682_s4 = scalar_lea.vmem %s71_s23, 2048  ;;  %p687_p8 = scmp.lt.s32.totalorder %s71_s23, %s71_s23 }
  0x4c   :  { %p683_p7 = scmp.ne.s32.totalorder %s71_s23, %s682_s4  ;;  %p688_p9 = scmp.lt.s32.totalorder %s682_s4, %s682_s4 }
  0x4e   :  { %p689_p10 = por %p688_p9, %p687_p8 }
  0x50   :  { %p690_p11 = pnand %p689_p10, %p683_p7 }
  0x52   :  { %693 = shalt.err (!%p690_p11)
}
  0x53   :  { %s731_s2 = smov 128   ;;  %s732_s28 = smov 8  }
  0x54   :  { %76 = dma.hbm_to_vmem [thread:$0]  %s875_s6, 2048, %s71_s23, [#allocation10], %s731_s2, %s731_s2, %s732_s28  }
  0x55   :  { %716 = dma.done.wait [#allocation4], 128  }
  0x56   :  { %717 = vsyncadd [#allocation4], 4294967168 }
  0x57   :  { %718 = dma.done.wait [#allocation7], 256  }
  0x58   :  { %719 = vsyncadd [#allocation7], 4294967040 }
  0x59   :  { %720 = dma.done.wait [#allocation10], 3072  }
  0x5a   :  { %721 = vsyncadd [#allocation10], 4294964224  ;;  %v733_v0 = vmov 0.0   ;;  %vm734_vm0 = vmmov 0   ;;  %v545_v1 = vld [vmem:[#allocation8] sm:$0xff]   ;;  %v95_v2 = vld [vmem:[#allocation3] sm:$0xff]  ;;  %v289_v47 = vlaneseq }
  0x5b   :  { %506 = vmatprep.subr.bf16.mxu0 %v733_v0  ;;  %424 = vst [vmem:[#allocation2] sm:$0xff] %v733_v0  ;;  %508 = vmatprep.mubr.msk.bf16.mxu0 %vm734_vm0, %v733_v0  ;;  %v96_v3 = vpack.c.bf16 %v95_v2, %v95_v2  ;;  %vm112_vm1 = vcmask 130048   ;;  %v546_v4 = vld [vmem:[#allocation9] sm:$0xff]   ;;  %v547_v5 = vld [vmem:[#allocation9 + $0x8] sm:$0xff]   ;;  %v548_v6 = vld [vmem:[#allocation9 + $0x10] sm:$0xff]   ;;  %v735_v36 = vmov 0  }
  0x5c   :  { %512 = vmatprep.subr.bf16.mxu1 %v733_v0  ;;  %528 = vmatprep.mubr.msk.bf16.mxu1 %vm734_vm0, %v733_v0  ;;  %v549_v7 = vld [vmem:[#allocation9 + $0x18] sm:$0xff]   ;;  %v550_v8 = vld [vmem:[#allocation9 + $0x20] sm:$0xff]   ;;  %v551_v9 = vld [vmem:[#allocation9 + $0x28] sm:$0xff]   ;;  %vm428_vm2 = vcmask 261120   ;;  %v290_v48 = vshrl.u32 %v289_v47, 7  ;;  %v434_v61 = vand.u32 127, %v289_v47 }
  0x5d   :  { %507 = vmatpush3.bf16.msra.mxu0 %v545_v1  ;;  %513 = vmatpush3.bf16.msra.mxu1 %v546_v4  ;;  %v552_v10 = vld [vmem:[#allocation9 + $0x30] sm:$0xff]   ;;  %v553_v11 = vld [vmem:[#allocation9 + $0x38] sm:$0xff]   ;;  %v554_v12 = vld [vmem:[#allocation11] ss:$8 sps:$4 sm:$0xff]  }
  0x5e   :  { %514 = vmatprep.subr.bf16.mxu1 %v733_v0  ;;  %v556_v13 = vld [vmem:[#allocation11 + $0x4] ss:$8 sps:$4 sm:$0xff]   ;;  %v559_v14 = vld [vmem:[#allocation11 + $0x14] ss:$8 sps:$4 sm:$0xff]   ;;  %v557_v15 = vld [vmem:[#allocation11 + $0x10] ss:$8 sps:$4 sm:$0xff]  }
  0x5f   :  { %379 = vmatprep.subr.bf16.mxu0 %v556_v13  ;;  %v562_v16 = vld [vmem:[#allocation11 + $0x24] ss:$8 sps:$4 sm:$0xff]   ;;  %v560_v17 = vld [vmem:[#allocation11 + $0x20] ss:$8 sps:$4 sm:$0xff]   ;;  %v565_v18 = vld [vmem:[#allocation11 + $0x34] ss:$8 sps:$4 sm:$0xff]  }
  0x60   :  { %509 = vmatmul.mubr.msk.bf16.vlgmr.msra.gmra.mrb[0].mxu0 %vm112_vm1, %v96_v3  ;;  %v563_v19 = vld [vmem:[#allocation11 + $0x30] ss:$8 sps:$4 sm:$0xff]   ;;  %v465_v20 = vld [vmem:[%s872_s3] ss:$0 sm:$0xff]  ;;  %v568_v28 = vld [vmem:[#allocation11 + $0x44] ss:$8 sps:$4 sm:$0xff]  }
  0x61   :  { %515 = vmatpush3.bf16.msra.mxu1 %v547_v5  ;;  %380 = vmatpush1.bf16.msra.mxu0 %v554_v12  ;;  %v566_v29 = vld [vmem:[#allocation11 + $0x40] ss:$8 sps:$4 sm:$0xff]   ;;  %v571_v30 = vld [vmem:[#allocation11 + $0x54] ss:$8 sps:$4 sm:$0xff]   ;;  %v569_v31 = vld [vmem:[#allocation11 + $0x50] ss:$8 sps:$4 sm:$0xff]  }
  0x62   :  { %516 = vmatprep.subr.bf16.mxu1 %v733_v0  ;;  %381 = vmatprep.subr.bf16.mxu0 %v559_v14  ;;  %v574_v32 = vld [vmem:[#allocation11 + $0x64] ss:$8 sps:$4 sm:$0xff]   ;;  %v572_v33 = vld [vmem:[#allocation11 + $0x60] ss:$8 sps:$4 sm:$0xff]   ;;  %v577_v34 = vld [vmem:[#allocation11 + $0x74] ss:$8 sps:$4 sm:$0xff]  }
  0x63   :  { %v575_v35 = vld [vmem:[#allocation11 + $0x70] ss:$8 sps:$4 sm:$0xff]   ;;  %411 = vmatprep.mubr.bf16.mxu0 %v735_v36  ;;  %v468_v37 = vld [vmem:[%s874_s5] ss:$0 sm:$0xff]  ;;  %v295_v49 = vsub.s32 1, %v290_v48  ;;  %vm435_vm3 = vcmp.lt.s32.totalorder %v434_v61, 32 }
  0x64   :  { %v425_v45 = vld [vmem:[#allocation6] sm:$0xff]  ;;  %v287_v50 = vld [vmem:[%s876_s7] sm:$0x3]  ;;  %v291_v3 = vsub.s32 0, %v290_v48  ;;  %vm443_vm4 = vcmp.eq.s32.totalorder %v434_v61, 32  ;;  %s736_s5 = smov [#allocation12]  }
  0x65   :  { %517 = vmatpush3.bf16.msra.mxu1 %v548_v6  ;;  %382 = vmatpush1.bf16.msra.mxu0 %v557_v15  ;;  %v493_v46 = vclamps-f32 %v425_v45, 10.0  ;;  %v296_v52 = vrot.slane %v287_v50, %v295_v49  ;;  %s454_s7 = sshll.u32 %s736_s5, 4  ;;  %s455_s7 = int_to_ptr.vmem [resolvable:$true] %s454_s7 }
  0x66   :  { %518 = vmatprep.subr.bf16.mxu1 %v733_v0  ;;  %383 = vmatprep.subr.bf16.mxu0 %v562_v16  ;;  %v292_v4 = vrot.slane %v287_v50, %v291_v3  ;;  %s694_s24 = scalar_lea.vmem %s455_s7, 64  ;;  %p699_p13 = scmp.lt.s32.totalorder %s455_s7, %s455_s7 }
  0x67   :  { %429 = vst.msk [vmem:[#allocation2] sm:$0xff] %vm428_vm2, %v493_v46  ;;  %p695_p12 = scmp.ne.s32.totalorder %s455_s7, %s694_s24  ;;  %p700_p0 = scmp.lt.s32.totalorder %s694_s24, %s694_s24 }
  0x69   :  { %519 = vmatpush3.bf16.msra.mxu1 %v549_v7  ;;  %384 = vmatpush1.bf16.msra.mxu0 %v560_v17  ;;  %p701_p1 = por %p700_p0, %p699_p13 }
  0x6a   :  { %520 = vmatprep.subr.bf16.mxu1 %v733_v0  ;;  %385 = vmatprep.subr.bf16.mxu0 %v565_v18 }
  0x6b   :  { %p702_p2 = pnand %p701_p1, %p695_p12 }
  0x6d   :  { %521 = vmatpush3.bf16.msra.mxu1 %v550_v8  ;;  %386 = vmatpush1.bf16.msra.mxu0 %v563_v19 }
  0x6e   :  { %522 = vmatprep.subr.bf16.mxu1 %v733_v0  ;;  %387 = vmatprep.subr.bf16.mxu0 %v568_v28  ;;  %v430_v51 = vld [vmem:[#allocation2] sm:$0xff] }
  0x6f   :  { %v436_v54 = vmul.f32 -0.5, %v430_v51 }
  0x71   :  { %523 = vmatpush3.bf16.msra.mxu1 %v551_v9  ;;  %388 = vmatpush1.bf16.msra.mxu0 %v566_v29  ;;  %v437_v60 = vmul.f32 %v436_v54, %v430_v51 }
  0x72   :  { %524 = vmatprep.subr.bf16.mxu1 %v733_v0  ;;  %389 = vmatprep.subr.bf16.mxu0 %v571_v30 }
  0x75   :  { %525 = vmatpush3.bf16.msra.mxu1 %v552_v10  ;;  %390 = vmatpush1.bf16.msra.mxu0 %v569_v31 }
  0x76   :  { %526 = vmatprep.subr.bf16.mxu1 %v733_v0  ;;  %391 = vmatprep.subr.bf16.mxu0 %v574_v32 }
  0x79   :  { %527 = vmatpush3.bf16.msra.mxu1 %v553_v11  ;;  %392 = vmatpush1.bf16.msra.mxu0 %v572_v33 }
  0x7a   :  { %393 = vmatprep.subr.bf16.mxu0 %v577_v34 }
  0x7d   :  { %394 = vmatpush1.bf16.msra.mxu0 %v575_v35 }
 0x133   :  { %v150_v21 = vpop.f32.mrb[0].mxu0 }
 0x134   :  { %v151_v22 = vadd.f32 %v465_v20, %v150_v21  ;;  %v510_v23 = vpop.f32.mrb[1].mxu0 }
 0x135   :  { %v153_v24 = vpop.f32.mrb[2].mxu0 }
 0x136   :  { %578 = vtanh.f32 %v151_v22  ;;  %v511_v25 = vpop.f32.mrb[3].mxu0 }
 0x140   :  { %v579_v26 = vpop.eup %578 }
 0x141   :  { %v157_v27 = vpack.c.bf16 %v579_v26, %v579_v26 }
 0x143   :  { %529 = vmatmul.mubr.bf16.vlgmr.msra.gmra.mrb[0].mxu1 %v157_v27 }
 0x216   :  { %v263_v38 = vpop.f32.mrb[0].mxu1 }
 0x217   :  { %v264_v39 = vadd.f32 %v468_v37, %v263_v38  ;;  %v530_v40 = vpop.f32.mrb[1].mxu1 }
 0x218   :  { %v266_v41 = vpop.f32.mrb[2].mxu1 }
 0x219   :  { %580 = vtanh.f32 %v264_v39  ;;  %v531_v42 = vpop.f32.mrb[3].mxu1 }
 0x223   :  { %v581_v43 = vpop.eup %580 }
 0x224   :  { %v270_v44 = vpack.c.bf16 %v581_v43, %v581_v43 }
 0x226   :  { %412 = vmatmul.mubr.bf16.vlgmr.msra.gmra.mrb[4].mxu0 %v270_v44 }
 0x2f9   :  { %v413_v53 = vpop.f32.mrb[4].mxu0 }
 0x2fa   :  { %v415_v55 = vpop.f32.mrb[5].mxu0  ;;  %v414_v6 = vadd.f32 %v413_v53, %v292_v4 }
 0x2fb   :  { %v416_v56 = vadd.f32 %v415_v55, %v296_v52  ;;  %v417_v57 = vpop.f32.mrb[6].mxu0 }
 0x2fc   :  { %v418_v58 = vpop.f32.mrb[7].mxu0 }
 0x2fd   :  { %v420_v59 = vmax.f32 %v416_v56, -5.0 }
 0x2ff   :  { %v421_v62 = vmin.f32 %v420_v59, 2.0 }
 0x301   :  { %v422_v63 = vmul.f32 1.442695, %v421_v62  ;;  %v438_v0 = vsub.f32 %v437_v60, %v421_v62 }
 0x303   :  { %582 = vpow2.f32 %v422_v63  ;;  %v494_v1 = vadd.f32 -0.9189385, %v438_v0 }
 0x305   :  { %v440_v2 = vsel %vm435_vm3, %v494_v1, 0.0 }
 0x306   :  { %441 = vadd.xlane.f32.xlu0 %v440_v2 }
 0x30d   :  { %v583_v5 = vpop.eup %582 }
 0x30e   :  { %v431_v7 = vmul.f32 %v583_v5, %v430_v51 }
 0x310   :  { %v432_v8 = vadd.f32 %v431_v7, %v414_v6 }
 0x312   :  { %v444_v9 = vsel %vm435_vm3, %v432_v8, 0.0 }
 0x393   :  { %v442_v10 = vpop.xlane.xlu0 %441 }
 0x394   :  { %v445_v11 = vsel %vm443_vm4, %v442_v10, %v444_v9 }
 0x395   :  { %v446_v12 = vpack.c.bf16 %v445_v11, %v445_v11 }
 0x397   :  { %447 = vst [vmem:[#allocation12] sm:$0xf] %v446_v12 }
 0x398   :  { %705 = shalt.err (!%p702_p2)
}
 0x399   :  { %s706_s27 = scalar_lea.hbm %s877_s8, 64 }
 0x39a   :  { %p707_p3 = scmp.ne.s32.totalorder %s877_s8, %s706_s27  ;;  %p710_p4 = scmp.lt.u32.totalorder %s706_s27, %s877_s8 }
 0x39c   :  { %p712_p5 = pnand %p710_p4, %p707_p3 }
 0x39e   :  { %715 = shalt.err (!%p712_p5)
}
 0x39f   :  { %457 = dma.vmem_to_hbm [thread:$0]  %s455_s7, 64, %s877_s8, [#allocation5]  }
 0x3a0   :  { %722 = dma.done.wait [#allocation5], 64  }
 0x3a1   :  { %723 = vsyncadd [#allocation5], 4294967232 }
 0x3a2   :  { %461 = vsyncpa [#allocation4], 1 }
 0x3a3   :  { %462 = vsyncpa [#allocation7], 1 }
 0x3a4   :  { %463 = vsyncpa [#allocation10], 1 }
 0x3a5   :  { %464 = vsyncpa [#allocation5], 1 }

</bundles_post_ra>
